<compile_context>
chip_gen: v7x
topology: tpu7x:2x2x1
jax: 0.10.0
libtpu: 0.0.40
codegen_flags: <defaults>
</compile_context>

<pallas_src>
import numpy as np

import jax
import jax.numpy as jnp
from jax import lax
from jax.experimental import pallas as pl
from jax.experimental.pallas import tpu as pltpu


def _vmem_spec():
    # Full-array block resident in VMEM (no grid -> single invocation).
    return pl.BlockSpec(memory_space=pltpu.MemorySpace.VMEM)


def _nbytes(*arrays):
    return sum(int(np.prod(a.shape)) * a.dtype.itemsize for a in arrays)


# ----------------------- shared in-kernel compute bodies ---------------------
def _actor_body(obs, w0, b0, wm, bm, wh, bh):
    """Linear->ReLU -> Linear->ReLU -> fused (mu | log_sigma) head.

    Returns a (B, 2A) slab: [:, :A] = mu, [:, A:] = sigma = exp(clip(log_sigma, -20, 2)).
    """
    h = jnp.maximum(jnp.dot(obs, w0, preferred_element_type=jnp.float32) + b0, 0.0)
    h = jnp.maximum(jnp.dot(h, wm, preferred_element_type=jnp.float32) + bm, 0.0)
    z = jnp.dot(h, wh, preferred_element_type=jnp.float32) + bh            # (B, 2A)
    A = z.shape[-1] // 2
    col = lax.broadcasted_iota(jnp.int32, z.shape, 1)
    # exp(clip(.)) is also evaluated on the mu half and discarded; the EUP slot is
    # free next to the MXU/VPU work, and this keeps the store a single full slab.
    return jnp.where(col < A, z, jnp.exp(jnp.clip(z, -20.0, 2.0)))


def _critic_body(obs, act, w1o, w1a, b1, w2t, b2):
    """All-E fused EnsembleHead (layer_num=1).  Returns q with shape (E, B)."""
    hc = (jnp.dot(obs, w1o, preferred_element_type=jnp.float32)
          + jnp.dot(act, w1a, preferred_element_type=jnp.float32) + b1)
    hc = jnp.maximum(hc, 0.0)                                              # (B, E*H)
    # (E, E*H) x (B, E*H) contracted on the E*H axis (NT form)  ->  (E, B):
    # output is already in PyTorch's permute(1, 0) layout, no wrapper transpose op.
    q = lax.dot_general(w2t, hc, (((1,), (1,)), ((), ())),
                        preferred_element_type=jnp.float32)
    return q + b2                                                          # (E, B)


# --------------------------------- kernels -----------------------------------
def _actor_kernel(obs_ref, w0_ref, b0_ref, wm_ref, bm_ref, wh_ref, bh_ref, out_ref):
    out_ref[...] = _actor_body(obs_ref[...], w0_ref[...], b0_ref[...],
                               wm_ref[...], bm_ref[...], wh_ref[...], bh_ref[...])


def _critic_kernel(obs_ref, act_ref, w1o_ref, w1a_ref, b1_ref, w2t_ref, b2_ref, q_ref):
    q_ref[...] = _critic_body(obs_ref[...], act_ref[...], w1o_ref[...], w1a_ref[...],
                              b1_ref[...], w2t_ref[...], b2_ref[...])


def _fused_kernel(obs_ref, act_ref,
                  w0_ref, b0_ref, wm_ref, bm_ref, wh_ref, bh_ref,
                  w1o_ref, w1a_ref, b1_ref, w2t_ref, b2_ref,
                  actor_ref, q_ref):
    obs = obs_ref[...]                                     # loaded once, used by both
    actor_ref[...] = _actor_body(obs, w0_ref[...], b0_ref[...], wm_ref[...],
                                 bm_ref[...], wh_ref[...], bh_ref[...])
    q_ref[...] = _critic_body(obs, act_ref[...], w1o_ref[...], w1a_ref[...],
                              b1_ref[...], w2t_ref[...], b2_ref[...])


# --------------------------------- wrappers ----------------------------------
@jax.jit
def actor_forward(obs, fp):
    """mode='compute_actor' -> {'logit': [mu, sigma]}."""
    B = obs.shape[0]
    H = fp['w0'].shape[1]
    A2 = fp['w_head'].shape[1]
    A = A2 // 2
    args = (obs, fp['w0'], fp['b0'], fp['w_main'], fp['b_main'],
            fp['w_head'], fp['b_head'])
    flops = 2 * B * (obs.shape[1] * H + H * H + H * A2)
    z = pl.pallas_call(
        _actor_kernel,
        out_shape=jax.ShapeDtypeStruct((B, A2), jnp.float32),
        in_specs=[_vmem_spec()] * len(args),
        out_specs=_vmem_spec(),
        cost_estimate=pl.CostEstimate(flops=flops, transcendentals=B * A2,
                                      bytes_accessed=_nbytes(*args) + B * A2 * 4),
    )(*args)
    return {'logit': [z[:, :A], z[:, A:]]}


@jax.jit
def critic_forward(obs, action, fp):
    """mode='compute_critic' -> {'q_value': (E, B)}."""
    if action.ndim == 1:
        action = action[:, None]
    B = obs.shape[0]
    EH = fp['cw1_obs'].shape[1]
    E = fp['cb2'].shape[0]
    args = (obs, action, fp['cw1_obs'], fp['cw1_act'], fp['cb1'],
            fp['cw2_bdT'], fp['cb2'])
    flops = 2 * B * (obs.shape[1] + action.shape[1]) * EH + 2 * E * EH * B
    q = pl.pallas_call(
        _critic_kernel,
        out_shape=jax.ShapeDtypeStruct((E, B), jnp.float32),
        in_specs=[_vmem_spec()] * len(args),
        out_specs=_vmem_spec(),
        cost_estimate=pl.CostEstimate(flops=flops, transcendentals=0,
                                      bytes_accessed=_nbytes(*args) + E * B * 4),
    )(*args)
    return {'q_value': q}


@jax.jit
def actor_critic_forward(obs, action, fp):
    """Both modes in ONE pallas_call (one dispatch, obs DMA'd once)."""
    if action.ndim == 1:
        action = action[:, None]
    B = obs.shape[0]
    H = fp['w0'].shape[1]
    A2 = fp['w_head'].shape[1]
    A = A2 // 2
    EH = fp['cw1_obs'].shape[1]
    E = fp['cb2'].shape[0]
    args = (obs, action,
            fp['w0'], fp['b0'], fp['w_main'], fp['b_main'], fp['w_head'], fp['b_head'],
            fp['cw1_obs'], fp['cw1_act'], fp['cb1'], fp['cw2_bdT'], fp['cb2'])
    flops = (2 * B * (obs.shape[1] * H + H * H + H * A2)
             + 2 * B * (obs.shape[1] + action.shape[1]) * EH + 2 * E * EH * B)
    z, q = pl.pallas_call(
        _fused_kernel,
        out_shape=(jax.ShapeDtypeStruct((B, A2), jnp.float32),
                   jax.ShapeDtypeStruct((E, B), jnp.float32)),
        in_specs=[_vmem_spec()] * len(args),
        out_specs=(_vmem_spec(), _vmem_spec()),
        cost_estimate=pl.CostEstimate(flops=flops, transcendentals=B * A2,
                                      bytes_accessed=_nbytes(*args) + (B * A2 + E * B) * 4),
    )(*args)
    return {'logit': [z[:, :A], z[:, A:]]}, {'q_value': q}


# ---------------------------- param init / fusing ----------------------------
def _linear(key, fan_in, fan_out):
    kw, kb = jax.random.split(key)
    bound = 1.0 / np.sqrt(fan_in)
    w = jax.random.uniform(kw, (fan_in, fan_out), jnp.float32, -bound, bound)
    b = jax.random.uniform(kb, (1, fan_out), jnp.float32, -bound, bound)
    return w, b


def init_params(key, obs_shape, action_shape, hidden, ensemble_num):
    keys = jax.random.split(key, 8)
    p = {}
    p['w0'], p['b0'] = _linear(keys[0], obs_shape, hidden)          # actor Linear
    p['w_main'], p['b_main'] = _linear(keys[1], hidden, hidden)     # head MLP
    p['w_mu'], p['b_mu'] = _linear(keys[2], hidden, action_shape)   # mu head
    p['w_ls'], p['b_ls'] = _linear(keys[3], hidden, action_shape)   # log_sigma head

    D = obs_shape + action_shape
    b1 = 1.0 / np.sqrt(D)
    b2 = 1.0 / np.sqrt(hidden)
    p['cw1'] = jax.random.uniform(keys[4], (ensemble_num, D, hidden), jnp.float32, -b1, b1)
    p['cb1'] = jax.random.uniform(keys[5], (ensemble_num, 1, hidden), jnp.float32, -b1, b1)
    p['cw2'] = jax.random.uniform(keys[6], (ensemble_num, 1, hidden), jnp.float32, -b2, b2)
    p['cb2'] = jax.random.uniform(keys[7], (ensemble_num, 1, 1), jnp.float32, -b2, b2)
    return p


def fuse_params(p, obs_shape, action_shape, hidden, ensemble_num):
    """One-time repack of raw params into the fused kernel layouts."""
    E, H = ensemble_num, hidden
    D = obs_shape + action_shape
    fp = {
        'w0': p['w0'], 'b0': p['b0'],
        'w_main': p['w_main'], 'b_main': p['b_main'],
        # fused mu/log_sigma head: (H, 2A), (1, 2A)
        'w_head': jnp.concatenate([p['w_mu'], p['w_ls']], axis=1),
        'b_head': jnp.concatenate([p['b_mu'], p['b_ls']], axis=1),
    }
    # (E, D, H) -> (D, E*H), split along D into obs/action halves (no runtime concat).
    w1 = jnp.transpose(p['cw1'], (1, 0, 2)).reshape(D, E * H)
    fp['cw1_obs'] = w1[:obs_shape]
    fp['cw1_act'] = w1[obs_shape:]
    fp['cb1'] = p['cb1'][:, 0, :].reshape(1, E * H)
    # Block-diagonal second layer, transposed layout (E, E*H): row e holds member e's
    # weights in columns e*H:(e+1)*H.  NT-form dot against h (B, E*H) yields (E, B).
    # TODO(synk): for EDAC-scale E (10-50) replace this O(E^2*H) block-diag with a VPU
    # elementwise multiply by the (1, E*H) w2 row + per-group lane reduction.
    w2 = p['cw2'][:, 0, :]                                   # (E, H)
    eye = jnp.eye(E, dtype=jnp.float32)
    fp['cw2_bdT'] = (eye[:, :, None] * w2[:, None, :]).reshape(E, E * H)
    fp['cb2'] = p['cb2'][:, 0, 0].reshape(E, 1)
    return fp


# ----------------------------- pure-JAX reference ----------------------------
def ref_actor(obs, p):
    h = jnp.maximum(obs @ p['w0'] + p['b0'], 0.0)
    h = jnp.maximum(h @ p['w_main'] + p['b_main'], 0.0)
    mu = h @ p['w_mu'] + p['b_mu']
    sigma = jnp.exp(jnp.clip(h @ p['w_ls'] + p['b_ls'], -20.0, 2.0))
    return mu, sigma


def ref_critic(obs, action, p):
    x = jnp.concatenate([obs, action], axis=-1)
    h = jnp.maximum(jnp.einsum('bd,edh->ebh', x, p['cw1']) + p['cb1'], 0.0)
    q = jnp.sum(h * p['cw2'], axis=-1) + p['cb2'][:, :, 0]
    return q  # (E, B)


if __name__ == "__main__":
    B, OBS, ACT, HID, E = 8, 32, 8, 64, 4

    key = jax.random.PRNGKey(0)
    kp, ko, ka = jax.random.split(key, 3)
    params = init_params(kp, OBS, ACT, HID, E)
    fparams = fuse_params(params, OBS, ACT, HID, E)
    obs = jax.random.normal(ko, (B, OBS), jnp.float32)
    action = jax.random.normal(ka, (B, ACT), jnp.float32)

    # Per-mode calls (module 'forward' with mode='compute_actor' / 'compute_critic').
    actor_out = actor_forward(obs, fparams)
    critic_out = critic_forward(obs, action, fparams)
    # Fused single-dispatch call (when the training/eval step needs both).
    fused_actor_out, fused_critic_out = actor_critic_forward(obs, action, fparams)
    jax.block_until_ready((actor_out, critic_out, fused_actor_out, fused_critic_out))

    mu_ref, sigma_ref = ref_actor(obs, params)
    q_ref = ref_critic(obs, action, params)

    for out in (actor_out, fused_actor_out):
        np.testing.assert_allclose(np.asarray(out['logit'][0]), np.asarray(mu_ref),
                                   rtol=1e-5, atol=1e-5)
        np.testing.assert_allclose(np.asarray(out['logit'][1]), np.asarray(sigma_ref),
                                   rtol=1e-5, atol=1e-5)
    for out in (critic_out, fused_critic_out):
        np.testing.assert_allclose(np.asarray(out['q_value']), np.asarray(q_ref),
                                   rtol=1e-5, atol=1e-5)

    assert critic_out['q_value'].shape == (E, B)
    assert fused_critic_out['q_value'].shape == (E, B)
    assert actor_out['logit'][0].shape == (B, ACT)
    assert actor_out['logit'][1].shape == (B, ACT)

    print("KERNEL_OK")
</pallas_src>

<mosaic_0001>
module attributes {stable_mosaic.version = 11 : i64} {
  func.func @_actor_kernel(%arg0: memref<8x32xf32, #tpu.memory_space<vmem>>, %arg1: memref<32x64xf32, #tpu.memory_space<vmem>>, %arg2: memref<1x64xf32, #tpu.memory_space<vmem>>, %arg3: memref<64x64xf32, #tpu.memory_space<vmem>>, %arg4: memref<1x64xf32, #tpu.memory_space<vmem>>, %arg5: memref<64x16xf32, #tpu.memory_space<vmem>>, %arg6: memref<1x16xf32, #tpu.memory_space<vmem>>, %arg7: memref<8x16xf32, #tpu.memory_space<vmem>>) attributes {dimension_semantics = [], scalar_prefetch = 0 : i64, scratch_operands = 0 : i64, tpu.core_type = #tpu.core_type<tc>} {
    %c0 = arith.constant 0 : index
    %c0_0 = arith.constant 0 : index
    %0 = vector.load %arg0[%c0, %c0_0] : memref<8x32xf32, #tpu.memory_space<vmem>>, vector<8x32xf32>
    %c0_1 = arith.constant 0 : index
    %c0_2 = arith.constant 0 : index
    %1 = vector.load %arg1[%c0_1, %c0_2] : memref<32x64xf32, #tpu.memory_space<vmem>>, vector<32x64xf32>
    %c0_3 = arith.constant 0 : index
    %c0_4 = arith.constant 0 : index
    %2 = vector.load %arg2[%c0_3, %c0_4] : memref<1x64xf32, #tpu.memory_space<vmem>>, vector<1x64xf32>
    %c0_5 = arith.constant 0 : index
    %c0_6 = arith.constant 0 : index
    %3 = vector.load %arg3[%c0_5, %c0_6] : memref<64x64xf32, #tpu.memory_space<vmem>>, vector<64x64xf32>
    %c0_7 = arith.constant 0 : index
    %c0_8 = arith.constant 0 : index
    %4 = vector.load %arg4[%c0_7, %c0_8] : memref<1x64xf32, #tpu.memory_space<vmem>>, vector<1x64xf32>
    %c0_9 = arith.constant 0 : index
    %c0_10 = arith.constant 0 : index
    %5 = vector.load %arg5[%c0_9, %c0_10] : memref<64x16xf32, #tpu.memory_space<vmem>>, vector<64x16xf32>
    %c0_11 = arith.constant 0 : index
    %c0_12 = arith.constant 0 : index
    %6 = vector.load %arg6[%c0_11, %c0_12] : memref<1x16xf32, #tpu.memory_space<vmem>>, vector<1x16xf32>
    %cst = arith.constant dense<0.000000e+00> : vector<8x64xf32>
    %7 = tpu.matmul %0, %1, %cst {dimension_numbers = #tpu.dot_dimension_numbers<[1], [0], [0], [1], [0, 0, 1, 1], [], []>} : vector<8x32xf32>, vector<32x64xf32>, vector<8x64xf32> -> vector<8x64xf32>
    %8 = vector.broadcast %2 : vector<1x64xf32> to vector<8x64xf32>
    %9 = arith.addf %7, %8 : vector<8x64xf32>
    %cst_13 = arith.constant 0.000000e+00 : f32
    %10 = vector.broadcast %cst_13 : f32 to vector<8x64xf32>
    %11 = arith.maximumf %9, %10 : vector<8x64xf32>
    %cst_14 = arith.constant dense<0.000000e+00> : vector<8x64xf32>
    %12 = tpu.matmul %11, %3, %cst_14 {dimension_numbers = #tpu.dot_dimension_numbers<[1], [0], [0], [1], [0, 0, 1, 1], [], []>} : vector<8x64xf32>, vector<64x64xf32>, vector<8x64xf32> -> vector<8x64xf32>
    %13 = vector.broadcast %4 : vector<1x64xf32> to vector<8x64xf32>
    %14 = arith.addf %12, %13 : vector<8x64xf32>
    %cst_15 = arith.constant 0.000000e+00 : f32
    %15 = vector.broadcast %cst_15 : f32 to vector<8x64xf32>
    %16 = arith.maximumf %14, %15 : vector<8x64xf32>
    %cst_16 = arith.constant dense<0.000000e+00> : vector<8x16xf32>
    %17 = tpu.matmul %16, %5, %cst_16 {dimension_numbers = #tpu.dot_dimension_numbers<[1], [0], [0], [1], [0, 0, 1, 1], [], []>} : vector<8x64xf32>, vector<64x16xf32>, vector<8x16xf32> -> vector<8x16xf32>
    %18 = vector.broadcast %6 : vector<1x16xf32> to vector<8x16xf32>
    %19 = arith.addf %17, %18 : vector<8x16xf32>
    %20 = tpu.iota {dimensions = array<i32: 1>} : vector<8x16xi32>
    %c8_i32 = arith.constant 8 : i32
    %21 = vector.broadcast %c8_i32 : i32 to vector<8x16xi32>
    %22 = arith.cmpi slt, %20, %21 : vector<8x16xi32>
    %cst_17 = arith.constant -2.000000e+01 : f32
    %cst_18 = arith.constant 2.000000e+00 : f32
    %23 = vector.broadcast %cst_17 : f32 to vector<8x16xf32>
    %24 = arith.maximumf %23, %19 : vector<8x16xf32>
    %25 = vector.broadcast %cst_18 : f32 to vector<8x16xf32>
    %26 = arith.minimumf %25, %24 : vector<8x16xf32>
    %27 = math.exp %26 : vector<8x16xf32>
    %28 = arith.select %22, %19, %27 : vector<8x16xi1>, vector<8x16xf32>
    %c0_19 = arith.constant 0 : index
    %c0_20 = arith.constant 0 : index
    %29 = vector.load %arg7[%c0_19, %c0_20] : memref<8x16xf32, #tpu.memory_space<vmem>>, vector<8x16xf32>
    tpu.vector_store %arg7[%c0_19, %c0_20], %28 {strides = array<i32>} : memref<8x16xf32, #tpu.memory_space<vmem>>, vector<8x16xf32>,
    return
  }
}

</mosaic_0001>

<bundles_post_ra>
// kernel: actor_forward.1
= control target key start
LH: loop header
LB: loop body
LE: loop exit
PB: predicated region body
PF: predicated region fallthrough
CT: control target
= control target key end

     0   :  { %12 = vsyncpa [#allocation3], 0  ;;  %s456_s24 = smov [#allocation2]   ;;  %s587_s0 = inlined_call_operand.hbm [shape: f32[8,32], index: 0, kind: input, shape index: {}]   ;;  %s588_s1 = inlined_call_operand.vmem [shape: f32[32,64], index: 1, kind: input, shape index: {}]   ;;  %s589_s2 = inlined_call_operand.vmem [shape: f32[1,64], index: 2, kind: input, shape index: {}]   ;;  %s590_s3 = inlined_call_operand.vmem [shape: f32[64,64], index: 3, kind: input, shape index: {}]   ;;  %s591_s4 = inlined_call_operand.vmem [shape: f32[1,64], index: 4, kind: input, shape index: {}]   ;;  %s592_s5 = inlined_call_operand.vmem [shape: f32[64,16], index: 5, kind: input, shape index: {}]   ;;  %s593_s6 = inlined_call_operand.vmem [shape: f32[1,16], index: 6, kind: input, shape index: {}]   ;;  %s594_s7 = inlined_call_operand.vmem [shape: f32[8,16], index: 7, kind: output, shape index: {}]  }
   0x1   :  { %s19_s25 = sshll.u32 %s456_s24, 4  ;;  %s432_s28 = scalar_lea.hbm %s587_s0, 128  ;;  %s20_s25 = int_to_ptr.vmem [resolvable:$true] %s19_s25 }
   0x2   :  { %p433_p0 = scmp.ne.s32.totalorder %s587_s0, %s432_s28  ;;  %p436_p1 = scmp.lt.u32.totalorder %s432_s28, %s587_s0 }
   0x4   :  { %p438_p2 = pnand %p436_p1, %p433_p0 }
   0x6   :  { %441 = shalt.err (!%p438_p2)
}
   0x7   :  { %s442_s10 = scalar_lea.vmem %s20_s25, 128  ;;  %p447_p4 = scmp.lt.s32.totalorder %s20_s25, %s20_s25 }
   0x8   :  { %p443_p3 = scmp.ne.s32.totalorder %s20_s25, %s442_s10  ;;  %p448_p5 = scmp.lt.s32.totalorder %s442_s10, %s442_s10 }
   0xa   :  { %p449_p6 = por %p448_p5, %p447_p4 }
   0xc   :  { %p450_p7 = pnand %p449_p6, %p443_p3 }
   0xe   :  { %453 = shalt.err (!%p450_p7)
}
   0xf   :  { %22 = dma.hbm_to_vmem [thread:$0]  %s587_s0, 128, %s20_s25, [#allocation3]  }
  0x10   :  { %454 = dma.done.wait [#allocation3], 128  }
  0x11   :  { %455 = vsyncadd [#allocation3], 4294967168  ;;  %v457_v0 = vmov 0.0|0.0   ;;  %vm458_vm0 = vmmov 0   ;;  %v459_v1 = vmov 0.0   ;;  %v39_v2 = vld [vmem:[%s588_s1] sm:$0xff]  ;;  %v303_v50 = vlaneseq }
  0x12   :  { %396 = vmatprep.subr.bf16.mxu0 %v457_v0  ;;  %355 = vmatprep.mubr.msk.f32.mxu0 %vm458_vm0, %v459_v1  ;;  %v40_v3 = vld [vmem:[%s588_s1 + $0x8] sm:$0xff]  ;;  %v41_v4 = vld [vmem:[%s588_s1 + $0x10] sm:$0xff]  ;;  %v42_v6 = vld [vmem:[%s588_s1 + $0x18] sm:$0xff]  ;;  %vm68_vm1 = vcmask 261120   ;;  %vm149_vm2 = vcmask 523264   ;;  %vm311_vm4 = vcmask 130048  }
  0x13   :  { %402 = vmatprep.subr.bf16.mxu1 %v457_v0  ;;  %374 = vmatprep.mubr.msk.f32.mxu1 %vm458_vm0, %v459_v1  ;;  %v397_v5 = vpack.c.bf16 %v40_v3, %v39_v2  ;;  %v44_v7 = vld [vmem:[%s590_s3] sm:$0xff]  ;;  %v45_v8 = vld [vmem:[%s590_s3 + $0x8] sm:$0xff]  ;;  %v46_v9 = vld [vmem:[%s590_s3 + $0x10] sm:$0xff]  ;;  %v400_v11 = vpack.c.bf16 %v42_v6, %v41_v4  ;;  %v304_v51 = vand.u32 127, %v303_v50 }
  0x14   :  { %v47_v10 = vld [vmem:[%s590_s3 + $0x18] sm:$0xff]  ;;  %v403_v12 = vpack.c.bf16 %v45_v8, %v44_v7  ;;  %v48_v14 = vld [vmem:[%s590_s3 + $0x20] sm:$0xff]  ;;  %v49_v15 = vld [vmem:[%s590_s3 + $0x28] sm:$0xff] }
  0x15   :  { %398 = vmatpush3.bf16.msra.mxu0 %v397_v5  ;;  %v406_v13 = vpack.c.bf16 %v47_v10, %v46_v9  ;;  %v38_v16 = vld [vmem:[#allocation2] sm:$0xff]  ;;  %v409_v17 = vpack.c.bf16 %v49_v15, %v48_v14  ;;  %v50_v18 = vld [vmem:[%s590_s3 + $0x30] sm:$0xff]  ;;  %v51_v19 = vld [vmem:[%s590_s3 + $0x38] sm:$0xff]  ;;  %vm305_vm3 = vcmp.lt.s32.totalorder %v304_v51, 8 }
  0x16   :  { %399 = vmatprep.subr.bf16.mxu0 %v457_v0  ;;  %404 = vmatpush3.bf16.msra.mxu1 %v403_v12  ;;  %v412_v20 = vpack.c.bf16 %v51_v19, %v50_v18  ;;  %v53_v21 = vld [vmem:[%s592_s5] sm:$0xff]  ;;  %v54_v22 = vld [vmem:[%s592_s5 + $0x8] sm:$0xff]  ;;  %v55_v23 = vld [vmem:[%s592_s5 + $0x10] sm:$0xff] }
  0x17   :  { %405 = vmatprep.subr.bf16.mxu1 %v457_v0  ;;  %v415_v24 = vpack.c.bf16 %v54_v22, %v53_v21  ;;  %v56_v25 = vld [vmem:[%s592_s5 + $0x18] sm:$0xff]  ;;  %v57_v27 = vld [vmem:[%s592_s5 + $0x20] sm:$0xff]  ;;  %v58_v28 = vld [vmem:[%s592_s5 + $0x28] sm:$0xff] }
  0x18   :  { %v418_v26 = vpack.c.bf16 %v56_v25, %v55_v23  ;;  %v421_v29 = vpack.c.bf16 %v58_v28, %v57_v27  ;;  %v318_v30 = vld [vmem:[%s589_s2] ss:$0 sm:$0xff]  ;;  %v59_v35 = vld [vmem:[%s592_s5 + $0x30] sm:$0xff]  ;;  %v60_v36 = vld [vmem:[%s592_s5 + $0x38] sm:$0xff] }
  0x19   :  { %401 = vmatpush3.bf16.msra.mxu0 %v400_v11  ;;  %v424_v37 = vpack.c.bf16 %v60_v36, %v59_v35  ;;  %v320_v38 = vld [vmem:[%s591_s4] ss:$0 sm:$0xff] }
  0x1a   :  { %414 = vmatprep.subr.bf16.mxu0 %v457_v0  ;;  %407 = vmatpush3.bf16.msra.mxu1 %v406_v13  ;;  %v322_v43 = vld [vmem:[%s593_s6] ss:$0 sm:$0xff] }
  0x1b   :  { %408 = vmatprep.subr.bf16.mxu1 %v457_v0 }
  0x1c   :  { %356 = vmatmul.mubr.msk.f32.vlgmr.msra.gmra.mrb[0].mxu0 %vm68_vm1, %v38_v16 }
  0x1d   :  { %393 = vmatprep.mubr.msk.f32.mxu0 %vm458_vm0, %v459_v1  ;;  %416 = vmatpush3.bf16.msra.mxu0 %v415_v24 }
  0x1e   :  { %410 = vmatpush3.bf16.msra.mxu1 %v409_v17  ;;  %417 = vmatprep.subr.bf16.mxu0 %v457_v0 }
  0x1f   :  { %411 = vmatprep.subr.bf16.mxu1 %v457_v0 }
  0x21   :  { %419 = vmatpush3.bf16.msra.mxu0 %v418_v26 }
  0x22   :  { %413 = vmatpush3.bf16.msra.mxu1 %v412_v20  ;;  %420 = vmatprep.subr.bf16.mxu0 %v457_v0 }
  0x25   :  { %422 = vmatpush3.bf16.msra.mxu0 %v421_v29 }
  0x26   :  { %423 = vmatprep.subr.bf16.mxu0 %v457_v0 }
  0x29   :  { %425 = vmatpush3.bf16.msra.mxu0 %v424_v37 }
  0xef   :  { %v138_v31 = vpop.f32.mrb[0].mxu0 }
  0xf0   :  { %v139_v32 = vadd.f32 %v318_v30, %v138_v31  ;;  %v357_v33 = vpop.f32.mrb[1].mxu0 }
  0xf2   :  { %v142_v34 = vmax.f32 %v139_v32, 0.0 }
  0xf4   :  { %375 = vmatmul.mubr.msk.f32.vlgmr.msra.gmra.mrb[0].mxu1 %vm149_vm2, %v142_v34 }
 0x1c7   :  { %v219_v39 = vpop.f32.mrb[0].mxu1 }
 0x1c8   :  { %v220_v40 = vadd.f32 %v320_v38, %v219_v39  ;;  %v376_v41 = vpop.f32.mrb[1].mxu1 }
 0x1ca   :  { %v223_v42 = vmax.f32 %v220_v40, 0.0 }
 0x1cc   :  { %394 = vmatmul.mubr.msk.f32.vlgmr.msra.gmra.mrb[2].mxu0 %vm149_vm2, %v223_v42 }
 0x29f   :  { %v299_v44 = vpop.f32.mrb[2].mxu0 }
 0x2a0   :  { %v300_v45 = vadd.f32 %v322_v43, %v299_v44  ;;  %v395_v46 = vpop.f32.mrb[3].mxu0 }
 0x2a2   :  { %v306_v47 = vmax.f32 %v300_v45, -20.0 }
 0x2a4   :  { %v307_v48 = vmin.f32 %v306_v47, 2.0 }
 0x2a6   :  { %v308_v49 = vmul.f32 1.442695, %v307_v48 }
 0x2a8   :  { %430 = vpow2.f32 %v308_v49 }
 0x2b2   :  { %v431_v52 = vpop.eup %430 }
 0x2b3   :  { %v310_v53 = vsel %vm305_vm3, %v300_v45, %v431_v52 }
 0x2b4   :  { %312 = vst.msk [vmem:[%s594_s7] sm:$0xff] %vm311_vm4, %v310_v53 }
 0x2b5   :  { %317 = vsyncpa [#allocation3], 1 }

</bundles_post_ra>
